<compile_context>
chip_gen: v5e
topology: v5e:2x2
jax: 0.10.0
libtpu: 0.0.40
codegen_flags: <defaults>
</compile_context>

<pallas_src>
import jax
import jax.numpy as jnp
from jax.experimental import pallas as pl
from jax.experimental.pallas import tpu as pltpu

IN_DIM = 512
PI_DIM = 64
VF_DIM = 64
OUT_DIM = PI_DIM + VF_DIM          # 128: exactly one lane-width -> unmasked stores
DEFAULT_BLOCK_M = 2048             # max batch tile; keeps f32 double-buffering < v5e's 16 MiB


def _round_up(n, m):
    return ((n + m - 1) // m) * m


def _choose_tile(batch, block_m):
    """Pick a batch tile: multiple of 16, <= block_m, aiming for >=4 grid steps."""
    if batch < 16:
        # Single block whose second-to-last dim equals the full array dim (legal layout).
        return batch
    tm = _round_up(pl.cdiv(batch, 4), 16)   # target ~4 grid steps (pipeline + 2 TCs on v7x)
    tm = max(128, min(tm, block_m))         # keep tiles reasonably large, cap for VMEM
    tm = min(tm, (batch // 16) * 16)        # never exceed B; stay a multiple of 16
    return tm


def _actor_critic_kernel(x_ref, w_ref, b_ref, o_ref):
    # In-kernel f32 -> bf16 cast of the activation tile (VPU, hidden under the DMA),
    # then one fused MXU matmul: (TM, 512) bf16 @ (512, 128) bf16 -> (TM, 128) f32.
    x_bf = x_ref[...].astype(jnp.bfloat16)
    acc = jnp.dot(x_bf, w_ref[...], preferred_element_type=jnp.float32)
    acc = acc + b_ref[...]                       # (TM, 128) + (1, 128) broadcast, f32
    o_ref[...] = jnp.maximum(acc, 0.0).astype(o_ref.dtype)


def fuse_params(w_pi, b_pi, w_vf, b_vf):
    """Fuse the two heads once (call at init, reuse across forwards)."""
    w = jnp.concatenate([w_pi, w_vf], axis=1).astype(jnp.bfloat16)            # (512, 128)
    b = jnp.concatenate(
        [jnp.reshape(b_pi, (1, PI_DIM)), jnp.reshape(b_vf, (1, VF_DIM))], axis=1
    ).astype(jnp.float32)                                                      # (1, 128)
    return w, b


def actor_critic_forward_fused(x, w_fused, b_fused, *,
                               block_m=DEFAULT_BLOCK_M, out_dtype=jnp.float32):
    """x: (B, 512) f32. Returns the fused (B, 128) block = [ReLU(x@W_pi+b_pi) | ReLU(x@W_vf+b_vf)]."""
    B = x.shape[0]
    tm = _choose_tile(B, block_m)
    grid = (pl.cdiv(B, tm),)                 # boundary block masked by Pallas; no jnp.pad

    return pl.pallas_call(
        _actor_critic_kernel,
        out_shape=jax.ShapeDtypeStruct((B, OUT_DIM), out_dtype),
        grid_spec=pltpu.PrefetchScalarGridSpec(
            num_scalar_prefetch=0,
            grid=grid,
            in_specs=[
                # x tile: pipelined/double-buffered over the batch grid (f32 stream).
                pl.BlockSpec((tm, IN_DIM), lambda i: (i, 0)),
                # fused weights + bias: constant index_map -> resident in VMEM across steps.
                pl.BlockSpec((IN_DIM, OUT_DIM), lambda i: (0, 0)),
                pl.BlockSpec((1, OUT_DIM), lambda i: (0, 0)),
            ],
            out_specs=pl.BlockSpec((tm, OUT_DIM), lambda i: (i, 0)),
        ),
        compiler_params=pltpu.CompilerParams(
            # Batch tiles are independent -> shard across v7x's 2 TensorCores.
            dimension_semantics=("parallel",),
        ),
    )(x, w_fused, b_fused)


def actor_critic_forward(x, w_pi, b_pi, w_vf, b_vf, **kw):
    """Convenience wrapper matching the PyTorch forward: returns (pi, vf), each (B, 64).

    Note: for the hot path, call fuse_params() once and actor_critic_forward_fused()
    per step; slicing the fused output here is fine inside a surrounding jit (it fuses),
    but outside jit it materializes two extra copies of the (small) output.
    """
    w, b = fuse_params(w_pi, b_pi, w_vf, b_vf)
    out = actor_critic_forward_fused(x, w, b, **kw)
    return out[:, :PI_DIM], out[:, PI_DIM:]


def init_params(key):
    # Deterministic synthetic params, shapes per nn.Linear(512, 64) (stored as [in, out]).
    k1, k2, k3, k4 = jax.random.split(key, 4)
    scale = 1.0 / jnp.sqrt(jnp.float32(IN_DIM))  # torch Linear default uniform bound
    w_pi = jax.random.uniform(k1, (IN_DIM, PI_DIM), jnp.float32, -scale, scale)
    b_pi = jax.random.uniform(k2, (1, PI_DIM), jnp.float32, -scale, scale)
    w_vf = jax.random.uniform(k3, (IN_DIM, VF_DIM), jnp.float32, -scale, scale)
    b_vf = jax.random.uniform(k4, (1, VF_DIM), jnp.float32, -scale, scale)
    return w_pi, b_pi, w_vf, b_vf


def _reference(x, w_pi, b_pi, w_vf, b_vf):
    # Plain-JAX reference using the same bf16-quantized input/weight streams as the kernel
    # (kernel accumulates in f32, so only the bf16 cast changes the numerics).
    x_q = x.astype(jnp.bfloat16).astype(jnp.float32)
    wp_q = w_pi.astype(jnp.bfloat16).astype(jnp.float32)
    wv_q = w_vf.astype(jnp.bfloat16).astype(jnp.float32)
    pi_ref = jnp.maximum(x_q @ wp_q + b_pi, 0.0)
    vf_ref = jnp.maximum(x_q @ wv_q + b_vf, 0.0)
    return pi_ref, vf_ref


if __name__ == "__main__":
    key = jax.random.PRNGKey(0)
    k_x1, k_x2, k_p = jax.random.split(key, 3)
    w_pi, b_pi, w_vf, b_vf = init_params(k_p)

    # Case 1: tiny demo batch (B=2) -> single full-dim block, grid=1.
    B1 = 2
    x1 = jax.random.normal(k_x1, (B1, IN_DIM), jnp.float32)
    pi1, vf1 = actor_critic_forward(x1, w_pi, b_pi, w_vf, b_vf)
    jax.block_until_ready((pi1, vf1))
    pi1_ref, vf1_ref = _reference(x1, w_pi, b_pi, w_vf, b_vf)
    assert pi1.shape == (B1, PI_DIM) and vf1.shape == (B1, VF_DIM)
    assert jnp.allclose(pi1, pi1_ref, atol=2e-3, rtol=2e-3), "pi mismatch (B=2)"
    assert jnp.allclose(vf1, vf1_ref, atol=2e-3, rtol=2e-3), "vf mismatch (B=2)"

    # Case 2: B not a multiple of the tile (B=100 -> tm=96, grid=2, masked boundary block).
    B2 = 100
    x2 = jax.random.normal(k_x2, (B2, IN_DIM), jnp.float32)
    w_fused, b_fused = fuse_params(w_pi, b_pi, w_vf, b_vf)   # hoisted fusion + bf16 cast
    out2 = actor_critic_forward_fused(x2, w_fused, b_fused)
    jax.block_until_ready(out2)
    pi2, vf2 = out2[:, :PI_DIM], out2[:, PI_DIM:]
    pi2_ref, vf2_ref = _reference(x2, w_pi, b_pi, w_vf, b_vf)
    assert out2.shape == (B2, OUT_DIM)
    assert jnp.allclose(pi2, pi2_ref, atol=2e-3, rtol=2e-3), "pi mismatch (B=100)"
    assert jnp.allclose(vf2, vf2_ref, atol=2e-3, rtol=2e-3), "vf mismatch (B=100)"

    print("KERNEL_OK")
</pallas_src>

<mosaic_0001>
module attributes {stable_mosaic.version = 11 : i64} {
  func.func @_actor_critic_kernel(%arg0: i32, %arg1: memref<2x512xf32, #tpu.memory_space<vmem>>, %arg2: memref<512x128xbf16, #tpu.memory_space<vmem>>, %arg3: memref<1x128xf32, #tpu.memory_space<vmem>>, %arg4: memref<2x128xf32, #tpu.memory_space<vmem>>) attributes {dimension_semantics = [#tpu.dimension_semantics<parallel>], iteration_bounds = array<i64: 1>, scalar_prefetch = 0 : i64, scratch_operands = 0 : i64, tpu.core_type = #tpu.core_type<tc>, window_params = [{transform_indices = @transform_0, window_bounds = array<i64: 2, 512>}, {pipeline_mode = #tpu.pipeline_mode<synchronous>, transform_indices = @transform_1, window_bounds = array<i64: 512, 128>}, {pipeline_mode = #tpu.pipeline_mode<synchronous>, transform_indices = @transform_2, window_bounds = array<i64: 1, 128>}, {transform_indices = @transform_3, window_bounds = array<i64: 2, 128>}]} {
    %c0 = arith.constant 0 : index
    %c0_0 = arith.constant 0 : index
    %0 = vector.load %arg1[%c0, %c0_0] : memref<2x512xf32, #tpu.memory_space<vmem>>, vector<2x512xf32>
    %1 = arith.truncf %0 : vector<2x512xf32> to vector<2x512xbf16>
    %c0_1 = arith.constant 0 : index
    %c0_2 = arith.constant 0 : index
    %2 = vector.load %arg2[%c0_1, %c0_2] : memref<512x128xbf16, #tpu.memory_space<vmem>>, vector<512x128xbf16>
    %cst = arith.constant dense<0.000000e+00> : vector<2x128xf32>
    %3 = tpu.matmul %1, %2, %cst {dimension_numbers = #tpu.dot_dimension_numbers<[1], [0], [0], [1], [0, 0, 1, 1], [], []>} : vector<2x512xbf16>, vector<512x128xbf16>, vector<2x128xf32> -> vector<2x128xf32>
    %c0_3 = arith.constant 0 : index
    %c0_4 = arith.constant 0 : index
    %4 = vector.load %arg3[%c0_3, %c0_4] : memref<1x128xf32, #tpu.memory_space<vmem>>, vector<1x128xf32>
    %5 = vector.broadcast %4 : vector<1x128xf32> to vector<2x128xf32>
    %6 = arith.addf %3, %5 : vector<2x128xf32>
    %cst_5 = arith.constant 0.000000e+00 : f32
    %7 = vector.broadcast %cst_5 : f32 to vector<2x128xf32>
    %8 = arith.maximumf %6, %7 : vector<2x128xf32>
    %c0_6 = arith.constant 0 : index
    %c0_7 = arith.constant 0 : index
    %9 = vector.load %arg4[%c0_6, %c0_7] : memref<2x128xf32, #tpu.memory_space<vmem>>, vector<2x128xf32>
    tpu.vector_store %arg4[%c0_6, %c0_7], %8 {strides = array<i32>} : memref<2x128xf32, #tpu.memory_space<vmem>>, vector<2x128xf32>,
    return
  }
  func.func @transform_0(%arg0: i32) -> (i32, i32) {
    %c0_i32 = arith.constant 0 : i32
    %c0_i32_0 = arith.constant 0 : i32
    return %arg0, %c0_i32 : i32, i32
  }
  func.func @transform_1(%arg0: i32) -> (i32, i32) {
    %c0_i32 = arith.constant 0 : i32
    %c0_i32_0 = arith.constant 0 : i32
    %c0_i32_1 = arith.constant 0 : i32
    return %c0_i32, %c0_i32_0 : i32, i32
  }
  func.func @transform_2(%arg0: i32) -> (i32, i32) {
    %c0_i32 = arith.constant 0 : i32
    %c0_i32_0 = arith.constant 0 : i32
    %c0_i32_1 = arith.constant 0 : i32
    return %c0_i32, %c0_i32_0 : i32, i32
  }
  func.func @transform_3(%arg0: i32) -> (i32, i32) {
    %c0_i32 = arith.constant 0 : i32
    %c0_i32_0 = arith.constant 0 : i32
    return %arg0, %c0_i32 : i32, i32
  }
}

</mosaic_0001>

<bundles_post_ra>
// kernel: tpu_custom_call.1
= control target key start
LH: loop header
LB: loop body
LE: loop exit
PB: predicated region body
PF: predicated region fallthrough
CT: control target
= control target key end

     0   :  { %8 = vsyncpa [#allocation3], 0  ;;  %s673_s0 = inlined_call_operand.hbm [shape: f32[2,512], index: 0, kind: input, shape index: {}]   ;;  %s674_s1 = inlined_call_operand.hbm [shape: bf16[512,128], index: 1, kind: input, shape index: {}]   ;;  %s675_s2 = inlined_call_operand.vmem [shape: f32[1,128], index: 2, kind: input, shape index: {}]   ;;  %s676_s3 = inlined_call_operand.hbm [shape: f32[2,128], index: 3, kind: output, shape index: {}]  }
   0x1   :  { %9 = vsyncpa [#allocation6], 0 }
   0x2   :  { %10 = vsyncpa [#allocation4], 0  ;;  %s16_s14 = sshll.u32 %s673_s0, 4  ;;  %s636_s15 = smov [#allocation2]   ;;  %s17_s14 = int_to_ptr.hbm [resolvable:$true] %s16_s14 }
   0x3   :  { %s18_s16 = sshll.u32 %s636_s15, 4  ;;  %s26_s19 = sshll.u32 %s674_s1, 4  ;;  %s19_s16 = int_to_ptr.vmem [resolvable:$true] %s18_s16  ;;  %s27_s19 = int_to_ptr.hbm [resolvable:$true] %s26_s19 }
   0x4   :  { %21 = dma.hbm_to_vmem [thread:$0]  %s17_s14, 128, %s19_s16, [#allocation3]  }
   0x5   :  { %s637_s20 = smov [#allocation5]   ;;  %s638_s22 = smov 64  }
   0x6   :  { %s28_s21 = sshll.u32 %s637_s20, 4  ;;  %s639_s23 = smov 4   ;;  %s29_s21 = int_to_ptr.vmem [resolvable:$true] %s28_s21 }
   0x7   :  { %34 = dma.hbm_to_vmem [thread:$0]  %s27_s19, 4096, %s29_s21, [#allocation6], %s638_s22, %s638_s22, %s639_s23  }
   0x8   :  { %630 = dma.done.wait [#allocation3], 128  }
   0x9   :  { %631 = vsyncadd [#allocation3], 4294967168 }
   0xa   :  { %632 = dma.done.wait [#allocation6], 4096  }
   0xb   :  { %633 = vsyncadd [#allocation6], 4294963200  ;;  %v527_v0 = vld [vmem:[#allocation5 + $0x38] sm:$0xff]  ;;  %v526_v4 = vld [vmem:[#allocation5 + $0x30] sm:$0xff]  ;;  %s640_s24 = smov [#allocation7]   ;;  %s381_s28 = sshll.u32 %s676_s3, 4  ;;  %s382_s28 = int_to_ptr.hbm [resolvable:$true] %s381_s28 }
   0xc   :  { %v535_v1 = vld [vmem:[#allocation5 + $0x78] sm:$0xff]  ;;  %320 = vmatpush.bf16.msra.mxu0 %v527_v0  ;;  %v534_v5 = vld [vmem:[#allocation5 + $0x70] sm:$0xff]  ;;  %v525_v8 = vld [vmem:[#allocation5 + $0x28] sm:$0xff]  ;;  %s379_s25 = sshll.u32 %s640_s24, 4  ;;  %s380_s25 = int_to_ptr.vmem [resolvable:$true] %s379_s25 }
   0xd   :  { %v543_v2 = vld [vmem:[#allocation5 + $0xb8] sm:$0xff]  ;;  %333 = vmatpush.bf16.msra.mxu1 %v535_v1  ;;  %v542_v6 = vld [vmem:[#allocation5 + $0xb0] sm:$0xff]  ;;  %v533_v9 = vld [vmem:[#allocation5 + $0x68] sm:$0xff] }
   0xe   :  { %v551_v3 = vld [vmem:[#allocation5 + $0xf8] sm:$0xff]  ;;  %346 = vmatpush.bf16.msra.mxu2 %v543_v2  ;;  %v550_v7 = vld [vmem:[#allocation5 + $0xf0] sm:$0xff]  ;;  %v541_v10 = vld [vmem:[#allocation5 + $0xa8] sm:$0xff] }
   0xf   :  { %359 = vmatpush.bf16.msra.mxu3 %v551_v3  ;;  %v549_v11 = vld [vmem:[#allocation5 + $0xe8] sm:$0xff]  ;;  %v524_v12 = vld [vmem:[#allocation5 + $0x20] sm:$0xff]  ;;  %v45_v14 = vld [vmem:[#allocation2] sm:$0xff] }
  0x10   :  { %321 = vmatpush.bf16.msra.mxu0 %v526_v4  ;;  %v532_v13 = vld [vmem:[#allocation5 + $0x60] sm:$0xff]  ;;  %47 = vst [vmem:[#allocation1] ss:$4 sm:$0xff] %v45_v14  ;;  %v523_v17 = vld [vmem:[#allocation5 + $0x18] sm:$0xff]  ;;  %v522_v21 = vld [vmem:[#allocation5 + $0x10] sm:$0xff] }
  0x11   :  { %334 = vmatpush.bf16.msra.mxu1 %v534_v5  ;;  %v540_v15 = vld [vmem:[#allocation5 + $0xa0] sm:$0xff]  ;;  %v531_v18 = vld [vmem:[#allocation5 + $0x58] sm:$0xff]  ;;  %v530_v22 = vld [vmem:[#allocation5 + $0x50] sm:$0xff] }
  0x12   :  { %347 = vmatpush.bf16.msra.mxu2 %v542_v6  ;;  %v548_v16 = vld [vmem:[#allocation5 + $0xe0] sm:$0xff]  ;;  %v539_v19 = vld [vmem:[#allocation5 + $0x98] sm:$0xff]  ;;  %v538_v23 = vld [vmem:[#allocation5 + $0x90] sm:$0xff] }
  0x13   :  { %360 = vmatpush.bf16.msra.mxu3 %v550_v7  ;;  %v547_v20 = vld [vmem:[#allocation5 + $0xd8] sm:$0xff]  ;;  %v546_v24 = vld [vmem:[#allocation5 + $0xd0] sm:$0xff]  ;;  %v521_v25 = vld [vmem:[#allocation5 + $0x8] sm:$0xff] }
  0x14   :  { %322 = vmatpush.bf16.msra.mxu0 %v525_v8  ;;  %v529_v26 = vld [vmem:[#allocation5 + $0x48] sm:$0xff]  ;;  %v520_v29 = vld [vmem:[#allocation5] sm:$0xff]  ;;  %v557_v41 = vld [vmem:[%s675_s2] ss:$0 sm:$0xff] }
  0x15   :  { %335 = vmatpush.bf16.msra.mxu1 %v533_v9  ;;  %v537_v27 = vld [vmem:[#allocation5 + $0x88] sm:$0xff]  ;;  %v528_v30 = vld [vmem:[#allocation5 + $0x40] sm:$0xff] }
  0x16   :  { %348 = vmatpush.bf16.msra.mxu2 %v541_v10  ;;  %v545_v28 = vld [vmem:[#allocation5 + $0xc8] sm:$0xff]  ;;  %v536_v31 = vld [vmem:[#allocation5 + $0x80] sm:$0xff] }
  0x17   :  { %361 = vmatpush.bf16.msra.mxu3 %v549_v11  ;;  %v544_v32 = vld [vmem:[#allocation5 + $0xc0] sm:$0xff]  ;;  %v48_v33 = vld.sshfl [vmem:[#allocation1] sm:$0xff pattern:$0x73625140] }
  0x18   :  { %323 = vmatpush.bf16.msra.mxu0 %v524_v12  ;;  %v49_v34 = vld.sshfl [vmem:[#allocation1 + $0x8] sm:$0xff pattern:$0x73625140]  ;;  %v50_v35 = vld.sshfl [vmem:[#allocation1 + $0x10] sm:$0xff pattern:$0x73625140]  ;;  %v56_v37 = vpack.c.bf16 %v48_v33, %v48_v33 }
  0x19   :  { %336 = vmatpush.bf16.msra.mxu1 %v532_v13  ;;  %v51_v36 = vld.sshfl [vmem:[#allocation1 + $0x18] sm:$0xff pattern:$0x73625140]  ;;  %v57_v38 = vpack.c.bf16 %v49_v34, %v49_v34  ;;  %v58_v39 = vpack.c.bf16 %v50_v35, %v50_v35 }
  0x1a   :  { %349 = vmatpush.bf16.msra.mxu2 %v540_v15  ;;  %v59_v40 = vpack.c.bf16 %v51_v36, %v51_v36 }
  0x1b   :  { %362 = vmatpush.bf16.msra.mxu3 %v548_v16 }
  0x1c   :  { %324 = vmatpush.bf16.msra.mxu0 %v523_v17 }
  0x1d   :  { %337 = vmatpush.bf16.msra.mxu1 %v531_v18 }
  0x1e   :  { %350 = vmatpush.bf16.msra.mxu2 %v539_v19 }
  0x1f   :  { %363 = vmatpush.bf16.msra.mxu3 %v547_v20 }
  0x20   :  { %325 = vmatpush.bf16.msra.mxu0 %v522_v21 }
  0x21   :  { %338 = vmatpush.bf16.msra.mxu1 %v530_v22 }
  0x22   :  { %351 = vmatpush.bf16.msra.mxu2 %v538_v23 }
  0x23   :  { %364 = vmatpush.bf16.msra.mxu3 %v546_v24 }
  0x24   :  { %326 = vmatpush.bf16.msra.mxu0 %v521_v25 }
  0x25   :  { %339 = vmatpush.bf16.msra.mxu1 %v529_v26 }
  0x26   :  { %352 = vmatpush.bf16.msra.mxu2 %v537_v27 }
  0x27   :  { %365 = vmatpush.bf16.msra.mxu3 %v545_v28 }
  0x28   :  { %327 = vmatpush.bf16.msra.mxu0 %v520_v29 }
  0x29   :  { %340 = vmatpush.bf16.msra.mxu1 %v528_v30 }
  0x2a   :  { %353 = vmatpush.bf16.msra.mxu2 %v536_v31 }
  0x2b   :  { %366 = vmatpush.bf16.msra.mxu3 %v544_v32  ;;  %328 = vmatmul.bf16.vlgmr.msra.gmra.mxu0 %v56_v37 }
  0x2c   :  { %341 = vmatmul.bf16.vlgmr.msra.gmra.mxu1 %v57_v38 }
  0x2d   :  { %354 = vmatmul.bf16.vlgmr.msra.gmra.mxu2 %v58_v39 }
  0x2e   :  { %367 = vmatmul.bf16.vlgmr.msra.gmra.mxu3 %v59_v40 }
  0xa8   :  { %v329_v42 = vpop.f32.mrf.mxu0 }
  0xa9   :  { %v342_v43 = vpop.f32.mrf.mxu1  ;;  %v330_v44 = vadd.f32 %v557_v41, %v329_v42 }
  0xab   :  { %v343_v45 = vadd.f32 %v342_v43, %v330_v44 }
  0xb0   :  { %v355_v46 = vpop.f32.mrf.mxu2  ;;  %v331_v49 = vpop.f32.mrf.mxu0 }
  0xb1   :  { %v368_v47 = vpop.f32.mrf.mxu3  ;;  %v356_v48 = vadd.f32 %v355_v46, %v343_v45  ;;  %v344_v50 = vpop.f32.mrf.mxu1 }
  0xb3   :  { %v369_v51 = vadd.f32 %v368_v47, %v356_v48 }
  0xb5   :  { %v372_v52 = vmax.f32 %v369_v51, 0.0 }
  0xb7   :  { %373 = vst [vmem:[#allocation7] sm:$0x3] %v372_v52 }
  0xb8   :  { %v357_v53 = vpop.f32.mrf.mxu2  ;;  %384 = dma.vmem_to_hbm [thread:$0]  %s380_s25, 32, %s382_s28, [#allocation4]  }
  0xb9   :  { %v370_v54 = vpop.f32.mrf.mxu3 }
  0xba   :  { %634 = dma.done.wait [#allocation4], 32  }
  0xbb   :  { %635 = vsyncadd [#allocation4], 4294967264 }
  0xbc   :  { %389 = vsyncpa [#allocation3], 1 }
  0xbd   :  { %390 = vsyncpa [#allocation6], 1 }
  0xbe   :  { %391 = vsyncpa [#allocation4], 1 }

</bundles_post_ra>
